<compile_context>
chip_gen: v7x
topology: tpu7x:2x2x1
jax: 0.10.0
libtpu: 0.0.40
codegen_flags: <defaults>
</compile_context>

<pallas_src>
import functools

import jax
import jax.numpy as jnp
from jax.experimental import pallas as pl
from jax.experimental.pallas import tpu as pltpu

BN_EPS = 1e-5


def _round_up(v, m):
    return (v + m - 1) // m * m


# ---------------- pass 1: batch statistics -> folded scale / shift ----------
def _bn_stats_kernel(x_ref, gamma_ref, beta_ref, scale_ref, shift_ref, *,
                     n_rows, eps):
    i = pl.program_id(0)

    @pl.when(i == 0)
    def _():
        scale_ref[...] = jnp.zeros_like(scale_ref)   # running sum(x)
        shift_ref[...] = jnp.zeros_like(shift_ref)   # running sum(x*x)

    x = x_ref[...].astype(jnp.float32)
    scale_ref[...] += jnp.sum(x, axis=0, keepdims=True)
    shift_ref[...] += jnp.sum(x * x, axis=0, keepdims=True)

    @pl.when(i == pl.num_programs(0) - 1)
    def _():
        s = scale_ref[...]
        sq = shift_ref[...]
        inv_n = 1.0 / n_rows
        mean = s * inv_n
        var = sq * inv_n - mean * mean                # biased batch variance
        inv_std = jax.lax.rsqrt(var + eps)
        scale = gamma_ref[...].astype(jnp.float32) * inv_std
        shift = beta_ref[...].astype(jnp.float32) - mean * scale
        scale_ref[...] = scale
        shift_ref[...] = shift


# ---------------- pass 2: fused (x * scale + shift) @ W + b -----------------
def _bn_linear_kernel(x_ref, scale_ref, shift_ref, w_ref, b_ref, o_ref):
    x = x_ref[...].astype(jnp.float32)
    y = x * scale_ref[...] + shift_ref[...]           # folded BN: 1 FMA / elem
    acc = jnp.dot(y.astype(w_ref.dtype), w_ref[...],
                  preferred_element_type=jnp.float32)
    o_ref[...] = (acc + b_ref[...]).astype(o_ref.dtype)


def state_classifier_forward(x, gamma, beta, weight_t, bias,
                             matmul_dtype=jnp.float32):
    """x: (N, F); gamma/beta: (1, F); weight_t: (F, O); bias: (1, O).

    matmul_dtype=jnp.bfloat16 is recommended on v6e/v7x (f32 accumulation is
    kept via preferred_element_type); the f32 default keeps tight parity with
    the f32 reference and is required for f32 elementwise math on v5e anyway.
    """
    n, f = x.shape
    o = weight_t.shape[1]

    f_pad = _round_up(f, 128)                 # lane-dense contraction dim
    o_pad = _round_up(o, 128)                 # lane-dense output dim
    tile_n = 128 if n >= 128 else _round_up(n, 8)
    n_pad = _round_up(n, tile_n)
    grid = (n_pad // tile_n,)

    x_p = jnp.pad(x.astype(jnp.float32), ((0, n_pad - n), (0, f_pad - f)))
    gamma_p = jnp.pad(gamma.astype(jnp.float32), ((0, 0), (0, f_pad - f)))
    beta_p = jnp.pad(beta.astype(jnp.float32), ((0, 0), (0, f_pad - f)))
    w_p = jnp.pad(weight_t, ((0, f_pad - f), (0, o_pad - o))).astype(matmul_dtype)
    b_p = jnp.pad(bias.astype(jnp.float32), ((0, 0), (0, o_pad - o)))

    vec_spec_f = pl.BlockSpec((1, f_pad), lambda i: (0, 0))

    # ---- pass 1: global batch stats (reduction axis -> "arbitrary") --------
    scale, shift = pl.pallas_call(
        functools.partial(_bn_stats_kernel, n_rows=n, eps=BN_EPS),
        out_shape=(jax.ShapeDtypeStruct((1, f_pad), jnp.float32),
                   jax.ShapeDtypeStruct((1, f_pad), jnp.float32)),
        grid=grid,
        in_specs=[pl.BlockSpec((tile_n, f_pad), lambda i: (i, 0)),
                  vec_spec_f, vec_spec_f],
        out_specs=(vec_spec_f, vec_spec_f),
        compiler_params=pltpu.CompilerParams(
            dimension_semantics=("arbitrary",),
            vmem_limit_bytes=32 * 1024 * 1024),
    )(x_p, gamma_p, beta_p)

    # ---- pass 2: tiled GEMM, resident weight, batch axis "parallel" --------
    bytes_accessed = 4 * (n_pad * f_pad + 2 * f_pad + o_pad + n_pad * o_pad) \
        + f_pad * o_pad * jnp.dtype(matmul_dtype).itemsize
    out_p = pl.pallas_call(
        _bn_linear_kernel,
        out_shape=jax.ShapeDtypeStruct((n_pad, o_pad), jnp.float32),
        grid=grid,
        in_specs=[pl.BlockSpec((tile_n, f_pad), lambda i: (i, 0)),
                  vec_spec_f, vec_spec_f,
                  pl.BlockSpec((f_pad, o_pad), lambda i: (0, 0)),
                  pl.BlockSpec((1, o_pad), lambda i: (0, 0))],
        out_specs=pl.BlockSpec((tile_n, o_pad), lambda i: (i, 0)),
        compiler_params=pltpu.CompilerParams(
            dimension_semantics=("parallel",),
            vmem_limit_bytes=32 * 1024 * 1024),
        cost_estimate=pl.CostEstimate(
            flops=2 * n_pad * f_pad * o_pad,
            transcendentals=0,
            bytes_accessed=int(bytes_accessed)),
    )(x_p, scale, shift, w_p, b_p)

    return out_p[:n, :o]


def init_params(key, input_size, output_size):
    """Deterministic parameter init mirroring the PyTorch module's __init__."""
    k_w, k_b = jax.random.split(key)

    # BatchNorm1d affine params: gamma=1, beta=0 (PyTorch default init).
    gamma = jnp.ones((1, input_size), jnp.float32)
    beta = jnp.zeros((1, input_size), jnp.float32)

    # Linear weight: xavier_uniform_, bound = sqrt(6 / (fan_in + fan_out)).
    bound_w = (6.0 / (input_size + output_size)) ** 0.5
    weight = jax.random.uniform(
        k_w, (output_size, input_size), jnp.float32, -bound_w, bound_w
    )
    weight_t = weight.T  # (F, O) layout for y @ W

    # Linear bias: PyTorch default uniform(-1/sqrt(fan_in), 1/sqrt(fan_in)).
    bound_b = 1.0 / (input_size ** 0.5)
    bias = jax.random.uniform(
        k_b, (1, output_size), jnp.float32, -bound_b, bound_b
    )
    return gamma, beta, weight_t, bias


if __name__ == "__main__":
    batch = 8
    input_size = 32
    output_size = 16

    key = jax.random.PRNGKey(0)
    k_x, k_p = jax.random.split(key)

    x = jax.random.normal(k_x, (batch, input_size), jnp.float32)
    gamma, beta, weight_t, bias = init_params(k_p, input_size, output_size)

    logits = state_classifier_forward(x, gamma, beta, weight_t, bias)
    jax.block_until_ready(logits)
    assert logits.shape == (batch, output_size)

    # Pure-JAX reference (training-mode BatchNorm semantics).
    mean = jnp.mean(x, axis=0, keepdims=True)
    var = jnp.mean((x - mean) ** 2, axis=0, keepdims=True)
    ref = ((x - mean) * jax.lax.rsqrt(var + BN_EPS)) * gamma + beta
    ref = ref @ weight_t + bias
    assert jnp.allclose(logits, ref, atol=1e-4, rtol=1e-4), "mismatch vs reference"

    print("KERNEL_OK")
</pallas_src>

<mosaic_0001>
module attributes {stable_mosaic.version = 11 : i64} {
  func.func @_bn_stats_kernel(%arg0: i32, %arg1: memref<8x128xf32, #tpu.memory_space<vmem>>, %arg2: memref<1x128xf32, #tpu.memory_space<vmem>>, %arg3: memref<1x128xf32, #tpu.memory_space<vmem>>, %arg4: memref<1x128xf32, #tpu.memory_space<vmem>>, %arg5: memref<1x128xf32, #tpu.memory_space<vmem>>) attributes {dimension_semantics = [#tpu.dimension_semantics<arbitrary>], iteration_bounds = array<i64: 1>, scalar_prefetch = 0 : i64, scratch_operands = 0 : i64, tpu.core_type = #tpu.core_type<tc>, window_params = [{transform_indices = @transform_0, window_bounds = array<i64: 8, 128>}, {pipeline_mode = #tpu.pipeline_mode<synchronous>, transform_indices = @transform_1, window_bounds = array<i64: 1, 128>}, {pipeline_mode = #tpu.pipeline_mode<synchronous>, transform_indices = @transform_2, window_bounds = array<i64: 1, 128>}, {pipeline_mode = #tpu.pipeline_mode<synchronous>, transform_indices = @transform_3, window_bounds = array<i64: 1, 128>}, {pipeline_mode = #tpu.pipeline_mode<synchronous>, transform_indices = @transform_4, window_bounds = array<i64: 1, 128>}]} {
    %c0_i32 = arith.constant 0 : i32
    %0 = arith.cmpi eq, %arg0, %c0_i32 : i32
    %1 = arith.extui %0 : i1 to i32
    %c0_i32_0 = arith.constant 0 : i32
    %2 = arith.cmpi ne, %1, %c0_i32_0 : i32
    scf.if %2 {
      %cst_13 = arith.constant 0.000000e+00 : f32
      %18 = vector.broadcast %cst_13 : f32 to vector<1x128xf32>
      %c0_14 = arith.constant 0 : index
      %c0_15 = arith.constant 0 : index
      %19 = vector.load %arg4[%c0_14, %c0_15] : memref<1x128xf32, #tpu.memory_space<vmem>>, vector<1x128xf32>
      tpu.vector_store %arg4[%c0_14, %c0_15], %18 {strides = array<i32>} : memref<1x128xf32, #tpu.memory_space<vmem>>, vector<1x128xf32>,
      %cst_16 = arith.constant 0.000000e+00 : f32
      %20 = vector.broadcast %cst_16 : f32 to vector<1x128xf32>
      %c0_17 = arith.constant 0 : index
      %c0_18 = arith.constant 0 : index
      %21 = vector.load %arg5[%c0_17, %c0_18] : memref<1x128xf32, #tpu.memory_space<vmem>>, vector<1x128xf32>
      tpu.vector_store %arg5[%c0_17, %c0_18], %20 {strides = array<i32>} : memref<1x128xf32, #tpu.memory_space<vmem>>, vector<1x128xf32>,
    } else {
    }
    %c0 = arith.constant 0 : index
    %c0_1 = arith.constant 0 : index
    %3 = vector.load %arg1[%c0, %c0_1] : memref<8x128xf32, #tpu.memory_space<vmem>>, vector<8x128xf32>
    %c0_2 = arith.constant 0 : index
    %c0_3 = arith.constant 0 : index
    %4 = vector.load %arg4[%c0_2, %c0_3] : memref<1x128xf32, #tpu.memory_space<vmem>>, vector<1x128xf32>
    %cst = arith.constant dense<0.000000e+00> : vector<128xf32>
    %5 = vector.multi_reduction <add>, %3, %cst [0] : vector<8x128xf32> to vector<128xf32>
    %6 = vector.shape_cast %5 : vector<128xf32> to vector<1x128xf32>
    %7 = arith.addf %4, %6 : vector<1x128xf32>
    %c0_4 = arith.constant 0 : index
    %c0_5 = arith.constant 0 : index
    %8 = vector.load %arg4[%c0_4, %c0_5] : memref<1x128xf32, #tpu.memory_space<vmem>>, vector<1x128xf32>
    tpu.vector_store %arg4[%c0_4, %c0_5], %7 {strides = array<i32>} : memref<1x128xf32, #tpu.memory_space<vmem>>, vector<1x128xf32>,
    %c0_6 = arith.constant 0 : index
    %c0_7 = arith.constant 0 : index
    %9 = vector.load %arg5[%c0_6, %c0_7] : memref<1x128xf32, #tpu.memory_space<vmem>>, vector<1x128xf32>
    %10 = arith.mulf %3, %3 : vector<8x128xf32>
    %cst_8 = arith.constant dense<0.000000e+00> : vector<128xf32>
    %11 = vector.multi_reduction <add>, %10, %cst_8 [0] : vector<8x128xf32> to vector<128xf32>
    %12 = vector.shape_cast %11 : vector<128xf32> to vector<1x128xf32>
    %13 = arith.addf %9, %12 : vector<1x128xf32>
    %c0_9 = arith.constant 0 : index
    %c0_10 = arith.constant 0 : index
    %14 = vector.load %arg5[%c0_9, %c0_10] : memref<1x128xf32, #tpu.memory_space<vmem>>, vector<1x128xf32>
    tpu.vector_store %arg5[%c0_9, %c0_10], %13 {strides = array<i32>} : memref<1x128xf32, #tpu.memory_space<vmem>>, vector<1x128xf32>,
    %c0_i32_11 = arith.constant 0 : i32
    %15 = arith.cmpi eq, %arg0, %c0_i32_11 : i32
    %16 = arith.extui %15 : i1 to i32
    %c0_i32_12 = arith.constant 0 : i32
    %17 = arith.cmpi ne, %16, %c0_i32_12 : i32
    scf.if %17 {
      %c0_13 = arith.constant 0 : index
      %c0_14 = arith.constant 0 : index
      %18 = vector.load %arg4[%c0_13, %c0_14] : memref<1x128xf32, #tpu.memory_space<vmem>>, vector<1x128xf32>
      %c0_15 = arith.constant 0 : index
      %c0_16 = arith.constant 0 : index
      %19 = vector.load %arg5[%c0_15, %c0_16] : memref<1x128xf32, #tpu.memory_space<vmem>>, vector<1x128xf32>
      %cst_17 = arith.constant 1.250000e-01 : f32
      %20 = vector.broadcast %cst_17 : f32 to vector<1x128xf32>
      %21 = arith.mulf %18, %20 : vector<1x128xf32>
      %cst_18 = arith.constant 1.250000e-01 : f32
      %22 = vector.broadcast %cst_18 : f32 to vector<1x128xf32>
      %23 = arith.mulf %19, %22 : vector<1x128xf32>
      %24 = arith.mulf %21, %21 : vector<1x128xf32>
      %25 = arith.subf %23, %24 : vector<1x128xf32>
      %cst_19 = arith.constant 9.99999974E-6 : f32
      %26 = vector.broadcast %cst_19 : f32 to vector<1x128xf32>
      %27 = arith.addf %25, %26 : vector<1x128xf32>
      %28 = math.rsqrt %27 : vector<1x128xf32>
      %c0_20 = arith.constant 0 : index
      %c0_21 = arith.constant 0 : index
      %29 = vector.load %arg2[%c0_20, %c0_21] : memref<1x128xf32, #tpu.memory_space<vmem>>, vector<1x128xf32>
      %30 = arith.mulf %29, %28 : vector<1x128xf32>
      %c0_22 = arith.constant 0 : index
      %c0_23 = arith.constant 0 : index
      %31 = vector.load %arg3[%c0_22, %c0_23] : memref<1x128xf32, #tpu.memory_space<vmem>>, vector<1x128xf32>
      %32 = arith.mulf %21, %30 : vector<1x128xf32>
      %33 = arith.subf %31, %32 : vector<1x128xf32>
      %c0_24 = arith.constant 0 : index
      %c0_25 = arith.constant 0 : index
      %34 = vector.load %arg4[%c0_24, %c0_25] : memref<1x128xf32, #tpu.memory_space<vmem>>, vector<1x128xf32>
      tpu.vector_store %arg4[%c0_24, %c0_25], %30 {strides = array<i32>} : memref<1x128xf32, #tpu.memory_space<vmem>>, vector<1x128xf32>,
      %c0_26 = arith.constant 0 : index
      %c0_27 = arith.constant 0 : index
      %35 = vector.load %arg5[%c0_26, %c0_27] : memref<1x128xf32, #tpu.memory_space<vmem>>, vector<1x128xf32>
      tpu.vector_store %arg5[%c0_26, %c0_27], %33 {strides = array<i32>} : memref<1x128xf32, #tpu.memory_space<vmem>>, vector<1x128xf32>,
    } else {
    }
    return
  }
  func.func @transform_0(%arg0: i32) -> (i32, i32) {
    %c0_i32 = arith.constant 0 : i32
    %c0_i32_0 = arith.constant 0 : i32
    return %arg0, %c0_i32 : i32, i32
  }
  func.func @transform_1(%arg0: i32) -> (i32, i32) {
    %c0_i32 = arith.constant 0 : i32
    %c0_i32_0 = arith.constant 0 : i32
    %c0_i32_1 = arith.constant 0 : i32
    return %c0_i32, %c0_i32_0 : i32, i32
  }
  func.func @transform_2(%arg0: i32) -> (i32, i32) {
    %c0_i32 = arith.constant 0 : i32
    %c0_i32_0 = arith.constant 0 : i32
    %c0_i32_1 = arith.constant 0 : i32
    return %c0_i32, %c0_i32_0 : i32, i32
  }
  func.func @transform_3(%arg0: i32) -> (i32, i32) {
    %c0_i32 = arith.constant 0 : i32
    %c0_i32_0 = arith.constant 0 : i32
    %c0_i32_1 = arith.constant 0 : i32
    return %c0_i32, %c0_i32_0 : i32, i32
  }
  func.func @transform_4(%arg0: i32) -> (i32, i32) {
    %c0_i32 = arith.constant 0 : i32
    %c0_i32_0 = arith.constant 0 : i32
    %c0_i32_1 = arith.constant 0 : i32
    return %c0_i32, %c0_i32_0 : i32, i32
  }
}

</mosaic_0001>

<bundles_post_ra>
// kernel: tpu_custom_call.1
= control target key start
LH: loop header
LB: loop body
LE: loop exit
PB: predicated region body
PF: predicated region fallthrough
CT: control target
= control target key end

     0   :  { %10 = vsyncpa [#allocation3], 0  ;;  %s252_s0 = inlined_call_operand.hbm [shape: f32[8,128], index: 0, kind: input, shape index: {}]   ;;  %s253_s1 = inlined_call_operand.vmem [shape: f32[1,128], index: 1, kind: input, shape index: {}]   ;;  %s254_s2 = inlined_call_operand.vmem [shape: f32[1,128], index: 2, kind: input, shape index: {}]   ;;  %s255_s3 = inlined_call_operand.hbm [shape: f32[1,128], index: 3, kind: output, shape index: {0}]   ;;  %s256_s4 = inlined_call_operand.hbm [shape: f32[1,128], index: 4, kind: output, shape index: {1}]  }
   0x1   :  { %11 = vsyncpa [#allocation4], 0 }
   0x2   :  { %12 = vsyncpa [#allocation7], 0  ;;  %s181_s15 = smov [#allocation2]   ;;  %s109_s19 = scalar_lea.hbm %s252_s0, 128 }
   0x3   :  { %s19_s16 = sshll.u32 %s181_s15, 4  ;;  %p110_p0 = scmp.ne.s32.totalorder %s252_s0, %s109_s19  ;;  %s20_s16 = int_to_ptr.vmem [resolvable:$true] %s19_s16 }
   0x4   :  { %p113_p1 = scmp.lt.u32.totalorder %s109_s19, %s252_s0 }
   0x6   :  { %p115_p2 = pnand %p113_p1, %p110_p0 }
   0x8   :  { %118 = shalt.err (!%p115_p2)
}
   0x9   :  { %s119_s24 = scalar_lea.vmem %s20_s16, 128  ;;  %p124_p4 = scmp.lt.s32.totalorder %s20_s16, %s20_s16 }
   0xa   :  { %p120_p3 = scmp.ne.s32.totalorder %s20_s16, %s119_s24  ;;  %p125_p5 = scmp.lt.s32.totalorder %s119_s24, %s119_s24 }
   0xc   :  { %p126_p6 = por %p125_p5, %p124_p4 }
   0xe   :  { %p127_p7 = pnand %p126_p6, %p120_p3 }
  0x10   :  { %130 = shalt.err (!%p127_p7)
}
  0x11   :  { %22 = dma.hbm_to_vmem [thread:$0]  %s252_s0, 128, %s20_s16, [#allocation3]  }
  0x12   :  { %175 = dma.done.wait [#allocation3], 128  }
  0x13   :  { %176 = vsyncadd [#allocation3], 4294967168  ;;  %v182_v0 = vmov 0.0   ;;  %v36_v1 = vld [vmem:[#allocation2] sm:$0xff]  ;;  %s183_s28 = smov [#allocation5]   ;;  %s184_s6 = smov [#allocation6]  }
  0x14   :  { %34 = vst [vmem:[#allocation5] sm:$0x1] %v182_v0  ;;  %35 = vst [vmem:[#allocation6] sm:$0x1] %v182_v0  ;;  %v38_v2 = vrot.slane %v36_v1, 4  ;;  %v47_v3 = vmul.f32 %v36_v1, %v36_v1  ;;  %s80_s29 = sshll.u32 %s183_s28, 4  ;;  %s81_s29 = int_to_ptr.vmem [resolvable:$true] %s80_s29 }
  0x15   :  { %v67_v26 = vld [vmem:[%s253_s1] sm:$0x1]  ;;  %s90_s7 = sshll.u32 %s184_s6, 4  ;;  %s131_s8 = scalar_lea.vmem %s81_s29, 16  ;;  %s91_s7 = int_to_ptr.vmem [resolvable:$true] %s90_s7 }
  0x16   :  { %v39_v4 = vadd.f32 %v38_v2, %v36_v1  ;;  %v48_v5 = vrot.slane %v47_v3, 4  ;;  %v69_v29 = vld [vmem:[%s254_s2] sm:$0x1]  ;;  %p132_p8 = scmp.ne.s32.totalorder %s81_s29, %s131_s8  ;;  %s135_s9 = scalar_lea.vmem %s81_s29, 32 }
  0x17   :  { %p136_p9 = scmp.lt.s32.totalorder %s81_s29, %s81_s29  ;;  %p137_p10 = scmp.lt.s32.totalorder %s135_s9, %s131_s8 }
  0x18   :  { %v40_v6 = vrot.slane %v39_v4, 2  ;;  %v49_v7 = vadd.f32 %v48_v5, %v47_v3 }
  0x19   :  { %p138_p11 = por %p137_p10, %p136_p9 }
  0x1a   :  { %v41_v8 = vadd.f32 %v40_v6, %v39_v4  ;;  %v50_v9 = vrot.slane %v49_v7, 2 }
  0x1b   :  { %v37_v12 = vld [vmem:[#allocation5] sm:$0x1]  ;;  %v46_v15 = vld [vmem:[#allocation6] sm:$0x1]  ;;  %p139_p12 = pnand %p138_p11, %p132_p8 }
  0x1c   :  { %v42_v10 = vrot.slane %v41_v8, 1  ;;  %v51_v11 = vadd.f32 %v50_v9, %v49_v7 }
  0x1e   :  { %v43_v13 = vadd.f32 %v42_v10, %v41_v8  ;;  %v52_v14 = vrot.slane %v51_v11, 1 }
  0x20   :  { %v44_v16 = vadd.f32 %v43_v13, %v37_v12  ;;  %v53_v17 = vadd.f32 %v52_v14, %v51_v11 }
  0x22   :  { %45 = vst [vmem:[#allocation5] sm:$0x1] %v44_v16  ;;  %v54_v18 = vadd.f32 %v53_v17, %v46_v15 }
  0x24   :  { %55 = vst [vmem:[#allocation6] sm:$0x1] %v54_v18 }
  0x29   :  { %v59_v19 = vld [vmem:[#allocation5] sm:$0x1] }
  0x2a   :  { %v61_v20 = vmul.f32 0.125, %v59_v19 }
  0x2b   :  { %v60_v21 = vld [vmem:[#allocation6] sm:$0x1] }
  0x2c   :  { %v62_v22 = vmul.f32 0.125, %v60_v21  ;;  %v63_v23 = vmul.f32 %v61_v20, %v61_v20 }
  0x2e   :  { %v64_v24 = vsub.f32 %v62_v22, %v63_v23 }
  0x30   :  { %v65_v25 = vadd.f32 1e-05, %v64_v24 }
  0x32   :  { %107 = vrsqrt.f32 %v65_v25 }
  0x3c   :  { %v108_v27 = vpop.eup %107 }
  0x3d   :  { %v68_v28 = vmul.f32 %v108_v27, %v67_v26 }
  0x3f   :  { %v70_v30 = vmul.f32 %v68_v28, %v61_v20  ;;  %72 = vst [vmem:[#allocation5] sm:$0x1] %v68_v28 }
  0x40   :  { %142 = shalt.err (!%p139_p12)
}
  0x41   :  { %s143_s11 = scalar_lea.hbm %s255_s3, 16 }
  0x42   :  { %p144_p13 = scmp.ne.s32.totalorder %s255_s3, %s143_s11  ;;  %p147_p0 = scmp.lt.u32.totalorder %s143_s11, %s255_s3 }
  0x44   :  { %p149_p1 = pnand %p147_p0, %p144_p13 }
  0x46   :  { %152 = shalt.err (!%p149_p1)
}
  0x47   :  { %83 = dma.vmem_to_hbm [thread:$0]  %s81_s29, 16, %s255_s3, [#allocation4]   ;;  %v71_v31 = vsub.f32 %v69_v29, %v70_v30 }
  0x48   :  { %s153_s17 = scalar_lea.vmem %s91_s7, 16  ;;  %s157_s18 = scalar_lea.vmem %s91_s7, 32 }
  0x49   :  { %73 = vst [vmem:[#allocation6] sm:$0x1] %v71_v31  ;;  %p154_p2 = scmp.ne.s32.totalorder %s91_s7, %s153_s17  ;;  %p158_p3 = scmp.lt.s32.totalorder %s91_s7, %s91_s7 }
  0x4a   :  { %p159_p4 = scmp.lt.s32.totalorder %s157_s18, %s153_s17 }
  0x4c   :  { %p160_p5 = por %p159_p4, %p158_p3 }
  0x4e   :  { %p161_p6 = pnand %p160_p5, %p154_p2 }
  0x50   :  { %164 = shalt.err (!%p161_p6)
}
  0x51   :  { %s165_s21 = scalar_lea.hbm %s256_s4, 16 }
  0x52   :  { %p166_p7 = scmp.ne.s32.totalorder %s256_s4, %s165_s21  ;;  %p169_p8 = scmp.lt.u32.totalorder %s165_s21, %s256_s4 }
  0x54   :  { %p171_p9 = pnand %p169_p8, %p166_p7 }
  0x56   :  { %174 = shalt.err (!%p171_p9)
}
  0x57   :  { %93 = dma.vmem_to_hbm [thread:$0]  %s91_s7, 16, %s256_s4, [#allocation7]  }
  0x58   :  { %177 = dma.done.wait [#allocation4], 16  }
  0x59   :  { %178 = vsyncadd [#allocation4], 4294967280 }
  0x5a   :  { %179 = dma.done.wait [#allocation7], 16  }
  0x5b   :  { %180 = vsyncadd [#allocation7], 4294967280 }
  0x5c   :  { %100 = vsyncpa [#allocation3], 1 }
  0x5d   :  { %101 = vsyncpa [#allocation4], 1 }
  0x5e   :  { %102 = vsyncpa [#allocation7], 1 }

</bundles_post_ra>
